<compile_context>
chip_gen: v5e
topology: v5e:2x2
jax: 0.10.0
libtpu: 0.0.40
codegen_flags: <defaults>
</compile_context>

<pallas_src>
import functools

import jax
import jax.numpy as jnp
from jax.experimental import pallas as pl
from jax.experimental.pallas import tpu as pltpu


def _dbclip_kernel(sims_ref, diag_col_ref, diag_row_ref, scale_ref, out_ref,
                   t2v_acc, m_acc, l_acc, *, threshold, n_rows):
    step = pl.program_id(0)
    n_steps = pl.num_programs(0)
    tm, n = sims_ref.shape
    needs_mask = (n_rows % tm) != 0   # static: only the ragged case pays for it

    @pl.when(step == 0)
    def _init():
        t2v_acc[...] = jnp.zeros_like(t2v_acc)
        m_acc[...] = jnp.full_like(m_acc, -jnp.inf)
        l_acc[...] = jnp.zeros_like(l_acc)

    sims = sims_ref[...].astype(jnp.float32)          # (TM, n) f32 compute
    d_col = diag_col_ref[...].astype(jnp.float32)     # (TM, 1) diag of this tile's rows
    d_row = diag_row_ref[...].astype(jnp.float32)     # (1, n)  full diagonal
    scale = jnp.exp(scale_ref[0, 0].astype(jnp.float32))

    thr = jnp.float32(threshold)
    lo = jnp.float32(0.05)
    # where(mask, -1e5, s) * scale  ==  where(mask, -1e5*scale, s*scale)
    neg_sentinel = jnp.float32(-100000.0) * scale

    # Shared subexpressions between the two branches.
    row_ids = jax.lax.broadcasted_iota(jnp.int32, (tm, n), 0) + step * tm
    col_ids = jax.lax.broadcasted_iota(jnp.int32, (tm, n), 1)
    not_eye = row_ids != col_ids
    gt_lo = sims > lo
    logits = sims * scale

    if needs_mask:
        row_valid = (jax.lax.broadcasted_iota(jnp.int32, (tm, 1), 0)
                     + step * tm) < n_rows            # (TM, 1) bool

    # ---- t2v branch: mask by row diagonal, softmax over dim=1 (within tile) ----
    row_mask = jnp.logical_and(not_eye, jnp.logical_and(sims > d_col * thr, gt_lo))
    rlogits = jnp.where(row_mask, neg_sentinel, logits)
    rmax = jnp.max(rlogits, axis=1, keepdims=True)
    rlse = jnp.log(jnp.sum(jnp.exp(rlogits - rmax), axis=1, keepdims=True)) + rmax
    # diag(log_softmax)_i == scale*d_i - lse_i  (diagonal is never masked)
    t2v_contrib = scale * d_col - rlse
    if needs_mask:
        t2v_contrib = jnp.where(row_valid, t2v_contrib, 0.0)
    t2v_acc[...] += jnp.sum(t2v_contrib, axis=0, keepdims=True)

    # ---- v2t branch: mask by column diagonal, online softmax over dim=0 ----
    col_mask = jnp.logical_and(not_eye, jnp.logical_and(sims > d_row * thr, gt_lo))
    clogits = jnp.where(col_mask, neg_sentinel, logits)
    if needs_mask:
        # Padding rows of a partial tile must not pollute the column statistics.
        clogits = jnp.where(row_valid, clogits, neg_sentinel)
    m_old = m_acc[...]
    m_new = jnp.maximum(m_old, jnp.max(clogits, axis=0, keepdims=True))
    l_acc[...] = (l_acc[...] * jnp.exp(m_old - m_new)
                  + jnp.sum(jnp.exp(clogits - m_new), axis=0, keepdims=True))
    m_acc[...] = m_new

    @pl.when(step == n_steps - 1)
    def _finalize():
        clse = jnp.log(l_acc[...]) + m_acc[...]        # (1, n) column LSE
        v2t_sum = jnp.sum(scale * d_row - clse)
        t2v_sum = jnp.sum(t2v_acc[...])
        out_ref[0, 0] = -(t2v_sum + v2t_sum) / jnp.float32(2 * n_rows)


def _pick_row_tile(n):
    """Largest multiple-of-8 row tile whose f32 working tile is ~<= 2 MiB
    (leaves ample headroom for the double-buffered input and the elementwise
    temporaries within every generation's scoped-VMEM budget)."""
    if n <= 8:
        return max(n, 1)
    budget_rows = max(8, (2 * 1024 * 1024) // (4 * n))
    tm = min(n, budget_rows, 1024)
    return max(8, (tm // 8) * 8)


def dbclip_loss(sims, logit_scale, threshold, *, tile_rows=None):
    """Pallas implementation of DBCLIPLoss.forward.

    sims: (n, n), text on dim 0, any float dtype (read natively, upcast in-kernel).
    logit_scale: (1, 1). Returns the scalar loss (f32). Any n >= 1 is supported.
    """
    n = sims.shape[0]
    tm = tile_rows if tile_rows is not None else _pick_row_tile(n)
    tm = min(tm, n)
    n_tiles = -(-n // tm)  # cdiv; last tile may be partial (masked in-kernel)

    diag = jnp.diagonal(sims)
    diag_col = diag.reshape(n, 1)
    diag_row = diag.reshape(1, n)
    scale = logit_scale.reshape(1, 1).astype(jnp.float32)

    kernel = functools.partial(_dbclip_kernel, threshold=float(threshold), n_rows=n)
    out = pl.pallas_call(
        kernel,
        out_shape=jax.ShapeDtypeStruct((1, 1), jnp.float32),
        grid_spec=pltpu.PrefetchScalarGridSpec(
            num_scalar_prefetch=0,
            grid=(n_tiles,),
            in_specs=[
                pl.BlockSpec((tm, n), lambda i: (i, 0)),      # sims row tile (pipelined)
                pl.BlockSpec((tm, 1), lambda i: (i, 0)),      # diagonal, column form
                pl.BlockSpec((1, n), lambda i: (0, 0)),       # diagonal, row form (constant block)
                pl.BlockSpec(memory_space=pltpu.SMEM),        # logit_scale scalar
            ],
            out_specs=pl.BlockSpec(memory_space=pltpu.SMEM),  # (1, 1) scalar loss
            scratch_shapes=[
                pltpu.VMEM((1, 1), jnp.float32),   # t2v accumulator
                pltpu.VMEM((1, n), jnp.float32),   # v2t running max (lane dense)
                pltpu.VMEM((1, n), jnp.float32),   # v2t running sum-exp (lane dense)
            ],
        ),
        compiler_params=pltpu.CompilerParams(
            dimension_semantics=("arbitrary",),    # carried reduction state
            vmem_limit_bytes=32 * 1024 * 1024,
        ),
    )(sims, diag_col, diag_row, scale)
    return out[0, 0]


def dbclip_loss_ref(sims, logit_scale, threshold):
    """Pure-JAX reference mirroring the PyTorch module."""
    n = sims.shape[0]
    sims = sims.astype(jnp.float32)
    eye = jnp.eye(n, dtype=bool)
    scale = jnp.exp(logit_scale.reshape(()).astype(jnp.float32))
    d = jnp.diagonal(sims)

    row_mask = (~eye) & (sims > d[:, None] * threshold) & (sims > 0.05)
    rlogits = jnp.where(row_mask, -100000.0, sims) * scale
    t2v = -jnp.mean(jnp.diagonal(jax.nn.log_softmax(rlogits, axis=1)))

    col_mask = (~eye) & (sims > d[None, :] * threshold) & (sims > 0.05)
    clogits = jnp.where(col_mask, -100000.0, sims) * scale
    v2t = -jnp.mean(jnp.diagonal(jax.nn.log_softmax(clogits, axis=0)))
    return (t2v + v2t) / 2.0


if __name__ == "__main__":
    threshold = 0.9
    key = jax.random.PRNGKey(0)
    logit_scale = jnp.full((1, 1), 2.6592, dtype=jnp.float32)  # ~log(1/0.07)

    # --- divisible case: n = 32 ---
    n = 32
    k0, k1 = jax.random.split(key)
    sims = jax.random.uniform(k0, (n, n), jnp.float32, minval=-1.0, maxval=1.0)
    sims = sims * 0.5 + 0.5 * jnp.eye(n, dtype=jnp.float32)

    ref = jax.block_until_ready(dbclip_loss_ref(sims, logit_scale, threshold))
    # Multi-tile path: 4 row tiles of 8 rows, exercising the online-softmax carry.
    loss_tiled = jax.block_until_ready(
        dbclip_loss(sims, logit_scale, threshold, tile_rows=8))
    # Auto-tile path (single tile at this small size).
    loss_auto = jax.block_until_ready(dbclip_loss(sims, logit_scale, threshold))
    assert jnp.allclose(loss_tiled, ref, rtol=1e-5, atol=1e-5), (loss_tiled, ref)
    assert jnp.allclose(loss_auto, ref, rtol=1e-5, atol=1e-5), (loss_auto, ref)

    # --- ragged case: n = 20 with tile_rows=8 exercises the masked partial tile ---
    n2 = 20
    sims2 = jax.random.uniform(k1, (n2, n2), jnp.float32, minval=-1.0, maxval=1.0)
    sims2 = sims2 * 0.5 + 0.5 * jnp.eye(n2, dtype=jnp.float32)
    ref2 = jax.block_until_ready(dbclip_loss_ref(sims2, logit_scale, threshold))
    loss2 = jax.block_until_ready(
        dbclip_loss(sims2, logit_scale, threshold, tile_rows=8))
    assert jnp.allclose(loss2, ref2, rtol=1e-5, atol=1e-5), (loss2, ref2)

    print("KERNEL_OK")
</pallas_src>

<mosaic_0001>
module attributes {stable_mosaic.version = 11 : i64} {
  func.func @_dbclip_kernel(%arg0: i32, %arg1: memref<8x32xf32, #tpu.memory_space<vmem>>, %arg2: memref<8x1xf32, #tpu.memory_space<vmem>>, %arg3: memref<1x32xf32, #tpu.memory_space<vmem>>, %arg4: memref<1x1xf32, #tpu.memory_space<smem>>, %arg5: memref<1x1xf32, #tpu.memory_space<smem>>, %arg6: memref<1x1xf32, #tpu.memory_space<vmem>>, %arg7: memref<1x32xf32, #tpu.memory_space<vmem>>, %arg8: memref<1x32xf32, #tpu.memory_space<vmem>>) attributes {dimension_semantics = [#tpu.dimension_semantics<arbitrary>], iteration_bounds = array<i64: 4>, scalar_prefetch = 0 : i64, scratch_operands = 3 : i64, tpu.core_type = #tpu.core_type<tc>, window_params = [{transform_indices = @transform_0, window_bounds = array<i64: 8, 32>}, {transform_indices = @transform_1, window_bounds = array<i64: 8, 1>}, {pipeline_mode = #tpu.pipeline_mode<synchronous>, transform_indices = @transform_2, window_bounds = array<i64: 1, 32>}, {transform_indices = @transform_3, window_bounds = array<i64: 1, 1>}, {transform_indices = @transform_4, window_bounds = array<i64: 1, 1>}]} {
    %c0_i32 = arith.constant 0 : i32
    %0 = arith.cmpi eq, %arg0, %c0_i32 : i32
    %1 = arith.extui %0 : i1 to i32
    %c0_i32_0 = arith.constant 0 : i32
    %2 = arith.cmpi ne, %1, %c0_i32_0 : i32
    scf.if %2 {
      %cst_29 = arith.constant 0.000000e+00 : f32
      %71 = vector.broadcast %cst_29 : f32 to vector<1x1xf32>
      %c0_30 = arith.constant 0 : index
      %c0_31 = arith.constant 0 : index
      %72 = vector.load %arg6[%c0_30, %c0_31] : memref<1x1xf32, #tpu.memory_space<vmem>>, vector<1x1xf32>
      tpu.vector_store %arg6[%c0_30, %c0_31], %71 {strides = array<i32>} : memref<1x1xf32, #tpu.memory_space<vmem>>, vector<1x1xf32>,
      %cst_32 = arith.constant 0xFF800000 : f32
      %73 = vector.broadcast %cst_32 : f32 to vector<1x32xf32>
      %c0_33 = arith.constant 0 : index
      %c0_34 = arith.constant 0 : index
      %74 = vector.load %arg7[%c0_33, %c0_34] : memref<1x32xf32, #tpu.memory_space<vmem>>, vector<1x32xf32>
      tpu.vector_store %arg7[%c0_33, %c0_34], %73 {strides = array<i32>} : memref<1x32xf32, #tpu.memory_space<vmem>>, vector<1x32xf32>,
      %cst_35 = arith.constant 0.000000e+00 : f32
      %75 = vector.broadcast %cst_35 : f32 to vector<1x32xf32>
      %c0_36 = arith.constant 0 : index
      %c0_37 = arith.constant 0 : index
      %76 = vector.load %arg8[%c0_36, %c0_37] : memref<1x32xf32, #tpu.memory_space<vmem>>, vector<1x32xf32>
      tpu.vector_store %arg8[%c0_36, %c0_37], %75 {strides = array<i32>} : memref<1x32xf32, #tpu.memory_space<vmem>>, vector<1x32xf32>,
    } else {
    }
    %c0 = arith.constant 0 : index
    %c0_1 = arith.constant 0 : index
    %3 = vector.load %arg1[%c0, %c0_1] : memref<8x32xf32, #tpu.memory_space<vmem>>, vector<8x32xf32>
    %c0_2 = arith.constant 0 : index
    %c0_3 = arith.constant 0 : index
    %4 = vector.load %arg2[%c0_2, %c0_3] : memref<8x1xf32, #tpu.memory_space<vmem>>, vector<8x1xf32>
    %c0_4 = arith.constant 0 : index
    %c0_5 = arith.constant 0 : index
    %5 = vector.load %arg3[%c0_4, %c0_5] : memref<1x32xf32, #tpu.memory_space<vmem>>, vector<1x32xf32>
    %c0_6 = arith.constant 0 : index
    %c0_7 = arith.constant 0 : index
    %6 = memref.load %arg4[%c0_6, %c0_7] : memref<1x1xf32, #tpu.memory_space<smem>>
    %7 = math.exp %6 : f32
    %cst = arith.constant -1.000000e+05 : f32
    %8 = arith.mulf %cst, %7 : f32
    %9 = tpu.iota {dimensions = array<i32: 0>} : vector<8x32xi32>
    %c8_i32 = arith.constant 8 : i32
    %10 = arith.muli %arg0, %c8_i32 : i32
    %11 = vector.broadcast %10 : i32 to vector<8x32xi32>
    %12 = arith.addi %9, %11 : vector<8x32xi32>
    %13 = tpu.iota {dimensions = array<i32: 1>} : vector<8x32xi32>
    %14 = arith.cmpi ne, %12, %13 : vector<8x32xi32>
    %cst_8 = arith.constant 5.000000e-02 : f32
    %15 = vector.broadcast %cst_8 : f32 to vector<8x32xf32>
    %16 = arith.cmpf ogt, %3, %15 : vector<8x32xf32>
    %17 = vector.broadcast %7 : f32 to vector<8x32xf32>
    %18 = arith.mulf %3, %17 : vector<8x32xf32>
    %cst_9 = arith.constant 0.899999976 : f32
    %19 = vector.broadcast %cst_9 : f32 to vector<8x1xf32>
    %20 = arith.mulf %4, %19 : vector<8x1xf32>
    %21 = vector.broadcast %20 : vector<8x1xf32> to vector<8x32xf32>
    %22 = arith.cmpf ogt, %3, %21 : vector<8x32xf32>
    %23 = arith.andi %22, %16 : vector<8x32xi1>
    %24 = arith.andi %14, %23 : vector<8x32xi1>
    %25 = vector.broadcast %8 : f32 to vector<8x32xf32>
    %26 = arith.select %24, %25, %18 : vector<8x32xi1>, vector<8x32xf32>
    %cst_10 = arith.constant dense<0xFF800000> : vector<8xf32>
    %27 = vector.multi_reduction <maximumf>, %26, %cst_10 [1] : vector<8x32xf32> to vector<8xf32>
    %28 = vector.shape_cast %27 : vector<8xf32> to vector<8x1xf32>
    %29 = vector.broadcast %28 : vector<8x1xf32> to vector<8x32xf32>
    %30 = arith.subf %26, %29 : vector<8x32xf32>
    %31 = math.exp %30 : vector<8x32xf32>
    %cst_11 = arith.constant dense<0.000000e+00> : vector<8xf32>
    %32 = vector.multi_reduction <add>, %31, %cst_11 [1] : vector<8x32xf32> to vector<8xf32>
    %33 = vector.shape_cast %32 : vector<8xf32> to vector<8x1xf32>
    %34 = math.log %33 : vector<8x1xf32>
    %35 = arith.addf %34, %28 : vector<8x1xf32>
    %36 = vector.broadcast %7 : f32 to vector<8x1xf32>
    %37 = arith.mulf %36, %4 : vector<8x1xf32>
    %38 = arith.subf %37, %35 : vector<8x1xf32>
    %c0_12 = arith.constant 0 : index
    %c0_13 = arith.constant 0 : index
    %39 = vector.load %arg6[%c0_12, %c0_13] : memref<1x1xf32, #tpu.memory_space<vmem>>, vector<1x1xf32>
    %cst_14 = arith.constant dense<0.000000e+00> : vector<1xf32>
    %40 = vector.multi_reduction <add>, %38, %cst_14 [0] : vector<8x1xf32> to vector<1xf32>
    %41 = vector.shape_cast %40 : vector<1xf32> to vector<1x1xf32>
    %42 = arith.addf %39, %41 : vector<1x1xf32>
    %c0_15 = arith.constant 0 : index
    %c0_16 = arith.constant 0 : index
    %43 = vector.load %arg6[%c0_15, %c0_16] : memref<1x1xf32, #tpu.memory_space<vmem>>, vector<1x1xf32>
    tpu.vector_store %arg6[%c0_15, %c0_16], %42 {strides = array<i32>} : memref<1x1xf32, #tpu.memory_space<vmem>>, vector<1x1xf32>,
    %cst_17 = arith.constant 0.899999976 : f32
    %44 = vector.broadcast %cst_17 : f32 to vector<1x32xf32>
    %45 = arith.mulf %5, %44 : vector<1x32xf32>
    %46 = vector.broadcast %45 : vector<1x32xf32> to vector<8x32xf32>
    %47 = arith.cmpf ogt, %3, %46 : vector<8x32xf32>
    %48 = arith.andi %47, %16 : vector<8x32xi1>
    %49 = arith.andi %14, %48 : vector<8x32xi1>
    %50 = vector.broadcast %8 : f32 to vector<8x32xf32>
    %51 = arith.select %49, %50, %18 : vector<8x32xi1>, vector<8x32xf32>
    %c0_18 = arith.constant 0 : index
    %c0_19 = arith.constant 0 : index
    %52 = vector.load %arg7[%c0_18, %c0_19] : memref<1x32xf32, #tpu.memory_space<vmem>>, vector<1x32xf32>
    %cst_20 = arith.constant dense<0xFF800000> : vector<32xf32>
    %53 = vector.multi_reduction <maximumf>, %51, %cst_20 [0] : vector<8x32xf32> to vector<32xf32>
    %54 = vector.shape_cast %53 : vector<32xf32> to vector<1x32xf32>
    %55 = arith.maximumf %52, %54 : vector<1x32xf32>
    %c0_21 = arith.constant 0 : index
    %c0_22 = arith.constant 0 : index
    %56 = vector.load %arg8[%c0_21, %c0_22] : memref<1x32xf32, #tpu.memory_space<vmem>>, vector<1x32xf32>
    %57 = arith.subf %52, %55 : vector<1x32xf32>
    %58 = math.exp %57 : vector<1x32xf32>
    %59 = arith.mulf %56, %58 : vector<1x32xf32>
    %60 = vector.broadcast %55 : vector<1x32xf32> to vector<8x32xf32>
    %61 = arith.subf %51, %60 : vector<8x32xf32>
    %62 = math.exp %61 : vector<8x32xf32>
    %cst_23 = arith.constant dense<0.000000e+00> : vector<32xf32>
    %63 = vector.multi_reduction <add>, %62, %cst_23 [0] : vector<8x32xf32> to vector<32xf32>
    %64 = vector.shape_cast %63 : vector<32xf32> to vector<1x32xf32>
    %65 = arith.addf %59, %64 : vector<1x32xf32>
    %c0_24 = arith.constant 0 : index
    %c0_25 = arith.constant 0 : index
    %66 = vector.load %arg8[%c0_24, %c0_25] : memref<1x32xf32, #tpu.memory_space<vmem>>, vector<1x32xf32>
    tpu.vector_store %arg8[%c0_24, %c0_25], %65 {strides = array<i32>} : memref<1x32xf32, #tpu.memory_space<vmem>>, vector<1x32xf32>,
    %c0_26 = arith.constant 0 : index
    %c0_27 = arith.constant 0 : index
    %67 = vector.load %arg7[%c0_26, %c0_27] : memref<1x32xf32, #tpu.memory_space<vmem>>, vector<1x32xf32>
    tpu.vector_store %arg7[%c0_26, %c0_27], %55 {strides = array<i32>} : memref<1x32xf32, #tpu.memory_space<vmem>>, vector<1x32xf32>,
    %c3_i32 = arith.constant 3 : i32
    %68 = arith.cmpi eq, %arg0, %c3_i32 : i32
    %69 = arith.extui %68 : i1 to i32
    %c0_i32_28 = arith.constant 0 : i32
    %70 = arith.cmpi ne, %69, %c0_i32_28 : i32
    scf.if %70 {
      %c0_29 = arith.constant 0 : index
      %c0_30 = arith.constant 0 : index
      %71 = vector.load %arg8[%c0_29, %c0_30] : memref<1x32xf32, #tpu.memory_space<vmem>>, vector<1x32xf32>
      %72 = math.log %71 : vector<1x32xf32>
      %c0_31 = arith.constant 0 : index
      %c0_32 = arith.constant 0 : index
      %73 = vector.load %arg7[%c0_31, %c0_32] : memref<1x32xf32, #tpu.memory_space<vmem>>, vector<1x32xf32>
      %74 = arith.addf %72, %73 : vector<1x32xf32>
      %75 = vector.broadcast %7 : f32 to vector<1x32xf32>
      %76 = arith.mulf %75, %5 : vector<1x32xf32>
      %77 = arith.subf %76, %74 : vector<1x32xf32>
      %78 = vector.shape_cast %77 : vector<1x32xf32> to vector<1x1x32xf32>
      %cst_33 = arith.constant dense<0.000000e+00> : vector<1xf32>
      %79 = vector.multi_reduction <add>, %78, %cst_33 [1, 2] : vector<1x1x32xf32> to vector<1xf32>
      %80 = vector.shape_cast %79 : vector<1xf32> to vector<1x1x1xf32>
      %81 = vector.extract %80[0, 0, 0] : f32 from vector<1x1x1xf32>
      %c0_34 = arith.constant 0 : index
      %c0_35 = arith.constant 0 : index
      %82 = vector.load %arg6[%c0_34, %c0_35] : memref<1x1xf32, #tpu.memory_space<vmem>>, vector<1x1xf32>
      %83 = vector.shape_cast %82 : vector<1x1xf32> to vector<1x1x1xf32>
      %cst_36 = arith.constant dense<0.000000e+00> : vector<1xf32>
      %84 = vector.multi_reduction <add>, %83, %cst_36 [1, 2] : vector<1x1x1xf32> to vector<1xf32>
      %85 = vector.shape_cast %84 : vector<1xf32> to vector<1x1x1xf32>
      %86 = vector.extract %85[0, 0, 0] : f32 from vector<1x1x1xf32>
      %87 = arith.addf %86, %81 : f32
      %cst_37 = arith.constant 0.000000e+00 : f32
      %88 = arith.subf %cst_37, %87 : f32
      %cst_38 = arith.constant 6.400000e+01 : f32
      %89 = arith.divf %88, %cst_38 : f32
      %c0_39 = arith.constant 0 : index
      %c0_40 = arith.constant 0 : index
      %90 = memref.load %arg5[%c0_39, %c0_40] : memref<1x1xf32, #tpu.memory_space<smem>>
      memref.store %89, %arg5[%c0_39, %c0_40] : memref<1x1xf32, #tpu.memory_space<smem>>
    } else {
    }
    return
  }
  func.func @transform_0(%arg0: i32) -> (i32, i32) {
    %c0_i32 = arith.constant 0 : i32
    %c0_i32_0 = arith.constant 0 : i32
    return %arg0, %c0_i32 : i32, i32
  }
  func.func @transform_1(%arg0: i32) -> (i32, i32) {
    %c0_i32 = arith.constant 0 : i32
    %c0_i32_0 = arith.constant 0 : i32
    return %arg0, %c0_i32 : i32, i32
  }
  func.func @transform_2(%arg0: i32) -> (i32, i32) {
    %c0_i32 = arith.constant 0 : i32
    %c0_i32_0 = arith.constant 0 : i32
    %c0_i32_1 = arith.constant 0 : i32
    return %c0_i32, %c0_i32_0 : i32, i32
  }
  func.func @transform_3(%arg0: i32) -> (i32, i32) {
    %c0_i32 = arith.constant 0 : i32
    %c0_i32_0 = arith.constant 0 : i32
    %c0_i32_1 = arith.constant 0 : i32
    return %c0_i32, %c0_i32_0 : i32, i32
  }
  func.func @transform_4(%arg0: i32) -> (i32, i32) {
    %c0_i32 = arith.constant 0 : i32
    %c0_i32_0 = arith.constant 0 : i32
    %c0_i32_1 = arith.constant 0 : i32
    return %c0_i32, %c0_i32_0 : i32, i32
  }
}

</mosaic_0001>

<bundles_post_ra>
// kernel: tpu_custom_call.1
= control target key start
LH: loop header
LB: loop body
LE: loop exit
PB: predicated region body
PF: predicated region fallthrough
CT: control target
= control target key end

     0   :  { %s573_s0 = inlined_call_operand.vmem [shape: f32[32,32], index: 0, kind: input, shape index: {}]   ;;  %s574_s1 = inlined_call_operand.vmem [shape: f32[32,1], index: 1, kind: input, shape index: {}]   ;;  %s575_s2 = inlined_call_operand.vmem [shape: f32[1,32], index: 2, kind: input, shape index: {}]   ;;  %s576_s3 = inlined_call_operand.<no memory space> [shape: f32[1,1], index: 3, kind: input, shape index: {}]   ;;  %s577_s4 = inlined_call_operand.hbm [shape: f32[1,1], index: 4, kind: output, shape index: {}]  }
   0x1   :  { %9 = sst [smem:[#allocation5]] %s576_s3 }
   0x2   :  { %10 = vsyncpa [#allocation7], 0  ;;  %s515_s17 = smov 0  }
   0x3 LB: > { %s521_s18 = sadd.s32 4294967295, %s480_s17   ;;  %p404_p0 = scmp.ge.s32.totalorder %s480_s17, 1  ;;  %s480_s17 = sphi %s515_s17, %s16_s17  }
   0x4   : > { %p167_p1 = scmp.lt.s32.totalorder %s480_s17, 5 }
   0x6   : > { %p168_p2 = pnand %p404_p0, %p167_p1 }
   0x7   : > { %p191_p3 = scmp.lt.s32.totalorder (!%p168_p2), %s521_s18, 3  ;;  %p407_p4 = scmp.ne.s32.totalorder (!%p168_p2), %s521_s18, 0 }
   0x8   : > { %171 = sbr.rel (%p168_p2) target bundleno = 626 (0x272), region = 36 }
   0xd   : > { %s192_s3 = scalar_select %p191_p3, %s521_s18, 3 }
   0xe   : > { %202 = sbr.rel (%p407_p4) target bundleno = 23 (0x17), region = 40 }
   0xf   : > { %s405_s19 = sshll.u32 %s192_s3, 3 }
  0x10   : > { %s530_s22 = scalar_lea.vmem %s573_s0, %s405_s19  ;;  %s198_s25 = scalar_lea.vmem %s574_s1, %s405_s19 }
  0x13   : > { %vm203_vm0 = vcmask 0   ;;  %vm205_vm1 = vcmask 253952   ;;  %v482_v0 = vmov 0.0   ;;  %v483_v1 = vmov -inf  }
  0x14   : > { %204 = vst.msk [vmem:[#allocation2] sm:$0x1] %vm203_vm0, %v482_v0 }
  0x15   : > { %206 = vst.msk [vmem:[#allocation3] sm:$0x1] %vm205_vm1, %v483_v1 }
  0x16   : > { %207 = vst.msk [vmem:[#allocation4] sm:$0x1] %vm205_vm1, %v482_v0 }
  0x17 PF: > { %v536_v2 = vld [vmem:[%s198_s25] sm:$0xff]  ;;  %s211_s26 = sld [smem:[#allocation5]]  ;;  %v484_v3 = vmov 0   ;;  %v217_v8 = vlaneseq  ;;  %s408_s29 = sshll.u32 %s521_s18, 3  ;;  %vm239_vm7 = vcmask 261120   ;;  %vm302_vm8 = vcmask 253952  }
  0x18   : > { %441 = vset.pattern.permute.xlu0 %v484_v3  ;;  %v228_v4 = vmul.f32 0.9, %v536_v2  ;;  %v542_v9 = vld [vmem:[%s575_s2] sm:$0x1]  ;;  %v220_v12 = vstv %s408_s29  ;;  %vm255_vm12 = vcmask 7168   ;;  %vm264_vm13 = vcmask 0  }
  0x19   : > { %v218_v10 = vshrl.u32 %v217_v8, 7  ;;  %v266_v11 = vmul.f32 0.9, %v542_v9  ;;  %v223_v14 = vand.u32 127, %v217_v8  ;;  %v208_v16 = vld [vmem:[%s530_s22] sm:$0xff]  ;;  %p409_p5 = scmp.ne.s32.totalorder %s521_s18, 3 }
  0x1a   : > { %231 = vperm.xlu0 %441, %v228_v4   ;;  %vm225_vm3 = vcmp.gt.f32.partialorder %v208_v16, 0.05 }
  0x1b   : > { %v221_v13 = vadd.s32 %v220_v12, %v218_v10  ;;  %v268_v15 = vperm.slane %v266_v11, 0  ;;  %v254_v4 = vld [vmem:[#allocation2] sm:$0x1] }
  0x1c   : > { %v274_v27 = vld [vmem:[#allocation3] sm:$0x1] }
  0x1d   : > { %v212_v5 = vstv %s211_s26  ;;  %vm224_vm2 = vcmp.ne.s32.totalorder %v221_v13, %v223_v14  ;;  %vm270_vm4 = vcmp.gt.f32.partialorder %v208_v16, %v268_v15  ;;  %v283_v41 = vld [vmem:[#allocation4] sm:$0x1] }
  0x1e   : > { %v213_v6 = vmul.f32 1.442695, %v212_v5  ;;  %vm271_vm5 = vmand %vm270_vm4, %vm225_vm3 }
  0x1f   : > { %vm272_vm6 = vmand %vm224_vm2, %vm271_vm5 }
  0x20   : > { %442 = vpow2.f32 %v213_v6 }
  0x26   : > { %v443_v7 = vpop.eup %442 }
  0x27   : > { %414 = vpush %v443_v7 }
  0x58   : > { %s415_s30 = spop %414 }
  0x59   : > { %s216_s5 = smul.f32 -100000.0, %s415_s30  ;;  %v548_v17 = vstv %s415_s30 }
  0x5a   : > { %v227_v18 = vmul.f32 %v548_v17, %v208_v16  ;;  %v252_v58 = vmul.f32 %v548_v17, %v536_v2 }
  0x5b   : > { %v237_v19 = vstv %s216_s5 }
  0x5c   : > { %v273_v20 = vsel %vm272_vm6, %v237_v19, %v227_v18 }
  0x5d   : > { %v275_v21 = vsel %vm239_vm7, %v273_v20, -inf }
  0x5e   : > { %v276_v22 = vrot.slane %v275_v21, 4 }
  0x60   : > { %v277_v23 = vmax.f32 %v275_v21, %v276_v22 }
  0x62   : > { %v278_v24 = vrot.slane %v277_v23, 2 }
  0x64   : > { %v279_v25 = vmax.f32 %v277_v23, %v278_v24 }
  0x66   : > { %v280_v26 = vrot.slane %v279_v25, 1 }
  0x68   : > { %v281_v28 = vmax.f32 %v279_v25, %v280_v26 }
  0x6a   : > { %v282_v29 = vmax.f32 %v274_v27, %v281_v28 }
  0x6c   : > { %v289_v30 = vperm.slane %v282_v29, 0  ;;  %304 = vst.msk [vmem:[#allocation3] sm:$0x1] %vm302_vm8, %v282_v29  ;;  %v284_v33 = vsub.f32 %v274_v27, %v282_v29 }
  0x6e   : > { %v291_v31 = vsub.f32 %v273_v20, %v289_v30  ;;  %v285_v34 = vmul.f32 1.442695, %v284_v33 }
  0x70   : > { %v292_v32 = vmul.f32 1.442695, %v291_v31 }
  0x72   : > { %444 = vpow2.f32 %v292_v32 }
  0x73   : > { %446 = vpow2.f32 %v285_v34 }
  0x78   : > { %v445_v35 = vpop.eup %444 }
  0x79   : > { %v294_v36 = vsel %vm239_vm7, %v445_v35, 0.0  ;;  %v447_v40 = vpop.eup %446 }
  0x7a   : > { %v295_v37 = vrot.slane %v294_v36, 4  ;;  %v287_v43 = vmul.f32 %v447_v40, %v283_v41 }
  0x7c   : > { %v296_v38 = vadd.f32 %v295_v37, %v294_v36 }
  0x7e   : > { %v297_v39 = vrot.slane %v296_v38, 2 }
  0x80   : > { %v298_v42 = vadd.f32 %v297_v39, %v296_v38 }
  0x82   : > { %v299_v44 = vrot.slane %v298_v42, 1 }
  0x84   : > { %v300_v45 = vadd.f32 %v299_v44, %v298_v42 }
  0x86   : > { %v301_v46 = vadd.f32 %v300_v45, %v287_v43 }
  0x88   : > { %303 = vst.msk [vmem:[#allocation4] sm:$0x1] %vm302_vm8, %v301_v46 }
  0x8c   : > { %v232_v47 = vpop.permute.xlu0 %231 }
  0x8d   : > { %vm234_vm9 = vcmp.gt.f32.partialorder %v208_v16, %v232_v47 }
  0x8e   : > { %vm235_vm10 = vmand %vm234_vm9, %vm225_vm3 }
  0x8f   : > { %vm236_vm11 = vmand %vm224_vm2, %vm235_vm10 }
  0x90   : > { %v238_v48 = vsel %vm236_vm11, %v237_v19, %v227_v18 }
  0x91   : > { %v240_v49 = vsel %vm239_vm7, %v238_v48, -inf }
  0x92   : > { %241 = vmax.xlane.f32.xlu0 %v240_v49 }
 0x105   : > { %v242_v50 = vpop.xlane.xlu0 %241 }
 0x106   : > { %v243_v51 = vsub.f32 %v238_v48, %v242_v50 }
 0x108   : > { %v244_v52 = vmul.f32 1.442695, %v243_v51 }
 0x10a   : > { %448 = vpow2.f32 %v244_v52 }
 0x110   : > { %v449_v53 = vpop.eup %448 }
 0x111   : > { %v246_v54 = vsel %vm239_vm7, %v449_v53, 0.0 }
 0x112   : > { %247 = vadd.xlane.f32.xlu1 %v246_v54 }
 0x185   : > { %v248_v55 = vpop.xlane.xlu1 %247 }
 0x186   : > { %450 = vlog2.f32 %v248_v55 }
 0x18c   : > { %v451_v56 = vpop.eup %450 }
 0x18d   : > { %v250_v57 = vmul.f32 0.6931472, %v451_v56 }
 0x18f   : > { %v251_v59 = vadd.f32 %v250_v57, %v242_v50 }
 0x191   : > { %v253_v60 = vsub.f32 %v252_v58, %v251_v59 }
 0x193   : > { %v256_v61 = vsel %vm255_vm12, %v253_v60, 0.0 }
 0x194   : > { %v257_v62 = vrot.slane %v256_v61, 4 }
 0x196   : > { %v258_v63 = vadd.f32 %v257_v62, %v256_v61 }
 0x198   : > { %v259_v0 = vrot.slane %v258_v63, 2 }
 0x19a   : > { %v260_v1 = vadd.f32 %v259_v0, %v258_v63 }
 0x19c   : > { %v261_v3 = vrot.slane %v260_v1, 1 }
 0x19e   : > { %v262_v5 = vadd.f32 %v261_v3, %v260_v1  ;;  %308 = sbr.rel (%p409_p5) target bundleno = 620 (0x26c), region = 44 }
 0x1a0   : > { %v263_v6 = vadd.f32 %v262_v5, %v254_v4 }
 0x1a2   : > { %265 = vst.msk [vmem:[#allocation2] sm:$0x1] %vm264_vm13, %v263_v6 }
 0x1a3   : > { %v309_v7 = vld [vmem:[#allocation4] sm:$0x1]  ;;  %v312_v8 = vld [vmem:[#allocation3] sm:$0x1]  ;;  %v314_v11 = vmul.f32 %v548_v17, %v542_v9  ;;  %v485_v15 = vmov 64.0  }
 0x1a4   : > { %452 = vlog2.f32 %v309_v7 }
 0x1a5   : > { %454 = vrcp.f32 %v485_v15 }
 0x1a9   : > { %v326_v17 = vld [vmem:[#allocation2] sm:$0x1] }
 0x1aa   : > { %v453_v2 = vpop.eup %452 }
 0x1ab   : > { %v311_v10 = vmul.f32 0.6931472, %v453_v2  ;;  %v455_v16 = vpop.eup %454 }
 0x1ac   : > { %v332_v18 = vmul.f32 64.0, %v455_v16  ;;  %vm336_vm14 = vweird.f32 %v455_v16 }
 0x1ad   : > { %v313_v12 = vadd.f32 %v312_v8, %v311_v10 }
 0x1ae   : > { %v333_v20 = vsub.f32 1.0, %v332_v18 }
 0x1af   : > { %v315_v13 = vsub.f32 %v314_v11, %v313_v12 }
 0x1b0   : > { %v334_v23 = vmul.f32 %v455_v16, %v333_v20 }
 0x1b1   : > { %v316_v14 = vsel %vm302_vm8, %v315_v13, 0.0 }
 0x1b2   : > { %317 = vadd.xlane.f32.xlu0 %v316_v14  ;;  %v335_v26 = vadd.f32 %v455_v16, %v334_v23 }
 0x1b4   : > { %v337_v28 = vsel %vm336_vm14, %v455_v16, %v335_v26 }
 0x225   : > { %v318_v19 = vpop.xlane.xlu0 %317 }
 0x226   : > { %v319_v21 = vrot.slane %v318_v19, 4 }
 0x228   : > { %v320_v22 = vadd.f32 %v319_v21, %v318_v19 }
 0x22a   : > { %v321_v24 = vrot.slane %v320_v22, 2 }
 0x22c   : > { %v322_v25 = vadd.f32 %v321_v24, %v320_v22 }
 0x22e   : > { %v323_v27 = vrot.slane %v322_v25, 1 }
 0x230   : > { %v324_v9 = vadd.f32 %v323_v27, %v322_v25 }
 0x232   : > { %416 = vpush %v324_v9 }
 0x233   : > { %418 = vpush %v326_v17 }
 0x234   : > { %420 = vpush %v337_v28 }
 0x263   : > { %s417_s6 = spop %416 }
 0x264   : > { %s419_s7 = spop %418 }
 0x265   : > { %s329_s8 = sadd.f32 %s419_s7, %s417_s6  ;;  %s421_s9 = spop %420 }
 0x267   : > { %s330_s10 = ssub.f32 0.0, %s329_s8 }
 0x269   : > { %s339_s11 = smul.f32 %s421_s9, %s330_s10 }
 0x26b   : > { %341 = sst [smem:[#allocation6]] %s339_s11 }
 0x26c PF: > { %p426_p6 = scmp.eq.s32.totalorder %s521_s18, 3  ;;  %s348_s14 = sshll.u32 %s577_s4, 4  ;;  %s349_s14 = int_to_ptr.hbm [resolvable:$true] %s348_s14 }
 0x26d   : > { %s486_s15 = smov [#allocation6]  }
 0x26e   : > { %423 = dma.smem_to_hbm (%p426_p6), %s486_s15, 16, %s349_s14, [#allocation7]  }
 0x26f   : > { %475 = dma.done.wait (%p426_p6), [#allocation7], 16  }
 0x270   : > { %477 = vsyncadd (%p426_p6), [#allocation7], 4294967280 }
 0x271   : > { %357 = sfence }
 0x272 PF: > { %s16_s17 = sadd.s32 1, %s480_s17  }
 0x273   : > { %p13_p7 = scmp.ge.s32.totalorder %s16_s17, 6  }
 0x275   :  { %15 = sbr.rel (!%p13_p7) target bundleno = 3 (0x3), region = 75 }
 0x27a   :  { %363 = vsyncpa [#allocation7], 1 }
 0x27b   :  { %365 = vsyncpa [#allocation7 + $0x1], 1 }

</bundles_post_ra>
